<compile_context>
chip_gen: v5e
topology: v5e:2x2
jax: 0.10.0
libtpu: 0.0.40
codegen_flags: <defaults>
</compile_context>

<pallas_src>
import jax
import jax.numpy as jnp
from jax.experimental import pallas as pl
from jax.experimental.pallas import tpu as pltpu

H = 32      # hidden size (cell.hidden_size)
B = 4       # batch size
Q = 2       # number of parent nodes fed to the cell
N = 2       # branches produced by the cell
K = 8       # global-condition memory length
LN_EPS = 1e-5
_INV_SQRT_H = float(H) ** -0.5

# Row indices of the packed "vecs" parameter array (shape [6 + N + 2, H]).
_R_BQ, _R_GQ, _R_BETQ = 0, 1, 2     # query-side Linear bias, LN gamma, LN beta
_R_BK, _R_GK, _R_BETK = 3, 4, 5     # key-side   Linear bias, LN gamma, LN beta
_R_CB = 6                           # rows 6 .. 6+N-1 : per-branch cell bias
_R_LB = 6 + N                       # rows 8, 9       : leaf bias (lane-broadcast)


# ----------------------------------------------------------------------------
# Fused kernel: cell -> attention -> leaf transform, all in one invocation.
# ----------------------------------------------------------------------------
def _fused_kernel(hc_ref, mem_ref, valid_ref, prev_ref,
                  cw_ref, wqk_ref, vecs_ref, lw_ref,
                  fb_ref, ctx_ref, log_ref):
    hc = hc_ref[...]              # [Q*B, 2H]   rows (q, b), cols [hidden | context]
    cw = cw_ref[...]              # [N*2H, H]   per-branch [Wh; Wc] stacked
    vecs = vecs_ref[...]          # [10, H]     packed biases / LN affines / leaf bias

    # ---- synthetic cell: one fused [h|c] matmul per branch + tanh ----------
    branches = []
    for n in range(N):
        br = jnp.tanh(
            jnp.dot(hc, cw[n * 2 * H:(n + 1) * 2 * H, :],
                    preferred_element_type=jnp.float32)
            + vecs[_R_CB + n:_R_CB + n + 1, :])
        branches.append(br)       # [Q*B, H], rows (q, b)

    # reorder to flat (q, n, b) rows == the module's flat_branches layout
    q_all = jnp.concatenate(
        [branches[n][q * B:(q + 1) * B, :] for q in range(Q) for n in range(N)],
        axis=0)                                                   # [Q*N*B, H]
    fb_ref[...] = q_all

    # ---- node attention ----------------------------------------------------
    def layer_norm(x, g, b):
        mu = jnp.mean(x, axis=-1, keepdims=True)
        var = jnp.mean((x - mu) ** 2, axis=-1, keepdims=True)
        return (x - mu) * jax.lax.rsqrt(var + LN_EPS) * g + b

    wqk = wqk_ref[...]            # [2H, H]  rows 0:H = Wq^T, rows H:2H = Wk^T
    mem_in = mem_ref[...]         # [K*B, H] rows (k, b)
    qp = layer_norm(jnp.dot(q_all, wqk[:H, :], preferred_element_type=jnp.float32)
                    + vecs[_R_BQ:_R_BQ + 1, :],
                    vecs[_R_GQ:_R_GQ + 1, :], vecs[_R_BETQ:_R_BETQ + 1, :])
    kp = layer_norm(jnp.dot(mem_in, wqk[H:, :], preferred_element_type=jnp.float32)
                    + vecs[_R_BK:_R_BK + 1, :],
                    vecs[_R_GK:_R_GK + 1, :], vecs[_R_BETK:_R_BETK + 1, :])

    scores = jnp.dot(qp, kp.T, preferred_element_type=jnp.float32) * _INV_SQRT_H
    valid = valid_ref[...] > 0.0                                  # [Q*N*B, K*B]

    # NOTE: PyTorch fills masked scores with scores.min() before the row-max; any
    # fill <= the valid scores gives an identical kmax for rows with >=1 valid key,
    # and fully-masked rows produce zero context either way -> output-equivalent.
    kmax = jnp.max(jnp.where(valid, scores, jnp.float32(-1e30)),
                   axis=-1, keepdims=True)
    exp_scores = jnp.where(valid, jnp.exp(scores - 2.0 * kmax), 0.0)   # exp(s - 2k)
    attn = exp_scores / (jnp.sum(exp_scores, axis=-1, keepdims=True) + 0.001)
    ctx = jnp.dot(attn, mem_in, preferred_element_type=jnp.float32)    # [Q*N*B, H]
    ctx_ref[...] = ctx

    # ---- leaf transform (2 classes, VPU) + log_softmax + update_logbreak ---
    lw = lw_ref[...]              # [4, H] rows: lwh0, lwh1, lwc0, lwc1
    lb0 = vecs[_R_LB:_R_LB + 1, 0:1]                              # [1, 1]
    lb1 = vecs[_R_LB + 1:_R_LB + 2, 0:1]
    logit0 = (jnp.sum(q_all * lw[0:1, :], axis=-1, keepdims=True)
              + jnp.sum(ctx * lw[2:3, :], axis=-1, keepdims=True) + lb0)
    logit1 = (jnp.sum(q_all * lw[1:2, :], axis=-1, keepdims=True)
              + jnp.sum(ctx * lw[3:4, :], axis=-1, keepdims=True) + lb1)
    m = jnp.maximum(logit0, logit1)
    lse = m + jnp.log(jnp.exp(logit0 - m) + jnp.exp(logit1 - m))
    prev = 0.5 * prev_ref[...]                                    # [Q*N*B, 1]
    log_ref[...] = jnp.concatenate(
        [prev + (logit0 - lse), prev + (logit1 - lse)], axis=1)   # [Q*N*B, 2]


# ----------------------------------------------------------------------------
# One-time parameter preparation (hoisted out of the forward path).
# ----------------------------------------------------------------------------
def prepare_params(params):
    Hn = params['attn_wq'].shape[0]
    ones = jnp.ones((1, Hn), jnp.float32)
    # per-branch [Wh; Wc] stacked -> single fused cell matmul per branch
    cw = jnp.concatenate(
        [jnp.concatenate([params['cell_wh'][n], params['cell_wc'][n]], axis=0)
         for n in range(N)], axis=0)                           # [N*2H, H]
    # q / k projection weights stacked (transposed so x @ W^T == Linear)
    wqk = jnp.concatenate([params['attn_wq'].T, params['attn_wk'].T], axis=0)  # [2H, H]
    # all per-feature vectors packed into one array (one DMA instead of eight)
    vecs = jnp.concatenate([
        params['attn_bq'][None, :], params['attn_gq'][None, :], params['attn_betaq'][None, :],
        params['attn_bk'][None, :], params['attn_gk'][None, :], params['attn_betak'][None, :],
        params['cell_b'],                                       # [N, H]
        params['leaf_b'][0] * ones, params['leaf_b'][1] * ones, # leaf bias, broadcast
    ], axis=0)                                                  # [6 + N + 2, H]
    # leaf weight split into hidden / context halves, rows per class
    lw = jnp.concatenate([params['leaf_w'][:, :Hn], params['leaf_w'][:, Hn:]],
                         axis=0)                                # [4, H]
    return {'cw': cw, 'wqk': wqk, 'vecs': vecs, 'lw': lw}


# ----------------------------------------------------------------------------
# Operator.forward
# ----------------------------------------------------------------------------
def operator_forward(prep, prev_hidden, prev_context, prev_log_leaf, global_cond):
    mem, mem_mask = global_cond
    Qn, Bn, Hn = prev_hidden.shape
    Kn = mem.shape[0]
    Nn = N
    QNB = Qn * Nn * Bn

    # [h | c] folded into one operand for the fused cell matmul
    hc_flat = jnp.concatenate([prev_hidden, prev_context],
                              axis=-1).reshape(Qn * Bn, 2 * Hn)
    mem_flat = mem.reshape(Kn * Bn, Hn)

    # valid[i, j]: query row i = (q, n, b_q), key row j = (k, b_k);
    # valid iff b_q == b_k and mem_mask[k, b_k].
    bq_idx = jnp.tile(jnp.arange(Bn), Qn * Nn)                    # [Q*N*B]
    bk_idx = jnp.tile(jnp.arange(Bn), Kn)                         # [K*B]
    same = bq_idx[:, None] == bk_idx[None, :]
    valid_f = (same & mem_mask.reshape(Kn * Bn)[None, :]).astype(jnp.float32)

    # previous log-break column broadcast over branches, in (q, n, b) row order
    prev_rows = jnp.broadcast_to(
        prev_log_leaf[:, None, :, 1], (Qn, Nn, Bn)).reshape(QNB, 1)

    vmem = pl.BlockSpec(memory_space=pltpu.MemorySpace.VMEM)
    fb, ctx, logl = pl.pallas_call(
        _fused_kernel,
        out_shape=(jax.ShapeDtypeStruct((QNB, Hn), jnp.float32),
                   jax.ShapeDtypeStruct((QNB, Hn), jnp.float32),
                   jax.ShapeDtypeStruct((QNB, 2), jnp.float32)),
        in_specs=[vmem] * 8,
        out_specs=(vmem, vmem, vmem),
    )(hc_flat, mem_flat, valid_f, prev_rows,
      prep['cw'], prep['wqk'], prep['vecs'], prep['lw'])

    flat_branches = fb.reshape(Qn * Nn, Bn, Hn)
    context = ctx.reshape(Qn * Nn, Bn, Hn)
    log_leaves = logl.reshape(Qn * Nn, Bn, 2)
    return flat_branches, context, log_leaves


# ----------------------------------------------------------------------------
# Synthetic cell (the PyTorch `cell` is an injected sub-module).
# ----------------------------------------------------------------------------
def cell_forward(params, hidden, context):
    # TODO(synk): `cell` is an injected module in the PyTorch code; a synthetic
    # 2-branch linear+tanh cell is used here (same math as inside the kernel).
    wh, wc, b = params['cell_wh'], params['cell_wc'], params['cell_b']
    return jnp.tanh(jnp.einsum('qbh,nhd->qbnd', hidden, wh)
                    + jnp.einsum('qbh,nhd->qbnd', context, wc)
                    + b[None, None, :, :])                        # [Q, B, N, H]


# ----------------------------------------------------------------------------
# Pure-JAX reference (mirrors the PyTorch math) for validation.
# ----------------------------------------------------------------------------
def _attention_ref(params, query, key, value, key_mask):
    def lin_ln(x, w, b, g, beta):
        y = x @ w.T + b
        mu = y.mean(-1, keepdims=True)
        var = ((y - mu) ** 2).mean(-1, keepdims=True)
        return (y - mu) / jnp.sqrt(var + LN_EPS) * g + beta

    q = lin_ln(query, params['attn_wq'], params['attn_bq'], params['attn_gq'], params['attn_betaq'])
    k = lin_ln(key, params['attn_wk'], params['attn_bk'], params['attn_gk'], params['attn_betak'])
    q_ = jnp.transpose(q, (1, 0, 2))
    k_ = jnp.transpose(k, (1, 2, 0))
    v_ = jnp.transpose(value, (1, 0, 2))
    scores = jnp.matmul(q_, k_) / jnp.sqrt(jnp.float32(H))
    mask = ~jnp.transpose(key_mask, (1, 0))[:, None, :]
    kmax = jnp.max(jnp.where(mask, jnp.min(scores), scores), axis=-1, keepdims=True)
    scores = scores - kmax
    exp_scores = jnp.where(mask, 0.0, jnp.exp(scores - kmax))
    attn = exp_scores / (exp_scores.sum(-1, keepdims=True) + 0.001)
    return jnp.transpose(jnp.matmul(attn, v_), (1, 0, 2))


def operator_forward_ref(params, prev_hidden, prev_context, prev_log_leaf, global_cond):
    mem, mem_mask = global_cond
    branches_struct = cell_forward(params, prev_hidden, prev_context)
    Qn, Bn, Nn, Hn = branches_struct.shape
    flat_branches = jnp.transpose(branches_struct, (0, 2, 1, 3)).reshape(Qn * Nn, Bn, Hn)
    context = _attention_ref(params, flat_branches, mem, mem, mem_mask)
    context_struct = jnp.transpose(context.reshape(Qn, Nn, Bn, Hn), (0, 2, 1, 3))
    cat = jnp.concatenate([branches_struct, context_struct], axis=-1)
    logits = cat @ params['leaf_w'].T + params['leaf_b']
    log_leaf_ = jax.nn.log_softmax(logits, axis=-1)
    log_leaf_struct = 0.5 * prev_log_leaf[:, :, None, 1:] + log_leaf_
    log_leaves = jnp.transpose(log_leaf_struct, (0, 2, 1, 3)).reshape(Qn * Nn, Bn, 2)
    return flat_branches, context, log_leaves


# ----------------------------------------------------------------------------
def make_params(key):
    ks = jax.random.split(key, 12)
    s = 0.1
    return {
        # Attention.query_t / key_t : Linear(H,H) + LayerNorm(H)
        'attn_wq':    s * jax.random.normal(ks[0], (H, H), jnp.float32),
        'attn_bq':    s * jax.random.normal(ks[1], (H,), jnp.float32),
        'attn_gq':    jnp.ones((H,), jnp.float32),
        'attn_betaq': jnp.zeros((H,), jnp.float32),
        'attn_wk':    s * jax.random.normal(ks[2], (H, H), jnp.float32),
        'attn_bk':    s * jax.random.normal(ks[3], (H,), jnp.float32),
        'attn_gk':    jnp.ones((H,), jnp.float32),
        'attn_betak': jnp.zeros((H,), jnp.float32),
        # leaf_transform: Linear(2H, 2)
        'leaf_w':     s * jax.random.normal(ks[4], (2, 2 * H), jnp.float32),
        'leaf_b':     s * jax.random.normal(ks[5], (2,), jnp.float32),
        # synthetic injected cell
        'cell_wh':    s * jax.random.normal(ks[6], (N, H, H), jnp.float32),
        'cell_wc':    s * jax.random.normal(ks[7], (N, H, H), jnp.float32),
        'cell_b':     s * jax.random.normal(ks[8], (N, H), jnp.float32),
    }


if __name__ == "__main__":
    root = jax.random.PRNGKey(0)
    kp, k1, k2, k3, k4 = jax.random.split(root, 5)
    params = make_params(kp)
    prep = prepare_params(params)          # one-time weight packing (hoisted)

    prev_hidden = jax.random.normal(k1, (Q, B, H), jnp.float32)
    prev_context = jax.random.normal(k2, (Q, B, H), jnp.float32)
    prev_log_leaf = jax.nn.log_softmax(jax.random.normal(k3, (Q, B, 2), jnp.float32), axis=-1)
    mem = jax.random.normal(k4, (K, B, H), jnp.float32)
    mem_mask = jnp.ones((K, B), jnp.bool_).at[K - 1, 0].set(False).at[K - 2, 1].set(False)
    global_cond = (mem, mem_mask)

    fwd = jax.jit(operator_forward)
    flat_branches, context, log_leaves = jax.block_until_ready(
        fwd(prep, prev_hidden, prev_context, prev_log_leaf, global_cond))

    fb_r, ctx_r, ll_r = operator_forward_ref(params, prev_hidden, prev_context,
                                             prev_log_leaf, global_cond)

    assert flat_branches.shape == (Q * N, B, H)
    assert context.shape == (Q * N, B, H)
    assert log_leaves.shape == (Q * N, B, 2)
    assert jnp.allclose(flat_branches, fb_r, atol=1e-4, rtol=1e-4)
    assert jnp.allclose(context, ctx_r, atol=1e-4, rtol=1e-4)
    assert jnp.allclose(log_leaves, ll_r, atol=1e-4, rtol=1e-4)
    print("KERNEL_OK")
</pallas_src>

<mosaic_0001>
module attributes {stable_mosaic.version = 11 : i64} {
  func.func @_fused_kernel(%arg0: memref<8x64xf32, #tpu.memory_space<vmem>>, %arg1: memref<32x32xf32, #tpu.memory_space<vmem>>, %arg2: memref<16x32xf32, #tpu.memory_space<vmem>>, %arg3: memref<16x1xf32, #tpu.memory_space<vmem>>, %arg4: memref<128x32xf32, #tpu.memory_space<vmem>>, %arg5: memref<64x32xf32, #tpu.memory_space<vmem>>, %arg6: memref<10x32xf32, #tpu.memory_space<vmem>>, %arg7: memref<4x32xf32, #tpu.memory_space<vmem>>, %arg8: memref<16x32xf32, #tpu.memory_space<vmem>>, %arg9: memref<16x32xf32, #tpu.memory_space<vmem>>, %arg10: memref<16x2xf32, #tpu.memory_space<vmem>>) attributes {dimension_semantics = [], scalar_prefetch = 0 : i64, scratch_operands = 0 : i64, tpu.core_type = #tpu.core_type<tc>} {
    %c0 = arith.constant 0 : index
    %c0_0 = arith.constant 0 : index
    %0 = vector.load %arg0[%c0, %c0_0] : memref<8x64xf32, #tpu.memory_space<vmem>>, vector<8x64xf32>
    %c0_1 = arith.constant 0 : index
    %c0_2 = arith.constant 0 : index
    %1 = vector.load %arg4[%c0_1, %c0_2] : memref<128x32xf32, #tpu.memory_space<vmem>>, vector<128x32xf32>
    %c0_3 = arith.constant 0 : index
    %c0_4 = arith.constant 0 : index
    %2 = vector.load %arg6[%c0_3, %c0_4] : memref<10x32xf32, #tpu.memory_space<vmem>>, vector<10x32xf32>
    %3 = vector.extract_strided_slice %1 {offsets = [0, 0], sizes = [64, 32], strides = [1, 1]} : vector<128x32xf32> to vector<64x32xf32>
    %cst = arith.constant dense<0.000000e+00> : vector<8x32xf32>
    %4 = tpu.matmul %0, %3, %cst {dimension_numbers = #tpu.dot_dimension_numbers<[1], [0], [0], [1], [0, 0, 1, 1], [], []>} : vector<8x64xf32>, vector<64x32xf32>, vector<8x32xf32> -> vector<8x32xf32>
    %5 = vector.extract_strided_slice %2 {offsets = [6, 0], sizes = [1, 32], strides = [1, 1]} : vector<10x32xf32> to vector<1x32xf32>
    %6 = vector.broadcast %5 : vector<1x32xf32> to vector<8x32xf32>
    %7 = arith.addf %4, %6 : vector<8x32xf32>
    %8 = math.tanh %7 : vector<8x32xf32>
    %9 = vector.extract_strided_slice %1 {offsets = [64, 0], sizes = [64, 32], strides = [1, 1]} : vector<128x32xf32> to vector<64x32xf32>
    %cst_5 = arith.constant dense<0.000000e+00> : vector<8x32xf32>
    %10 = tpu.matmul %0, %9, %cst_5 {dimension_numbers = #tpu.dot_dimension_numbers<[1], [0], [0], [1], [0, 0, 1, 1], [], []>} : vector<8x64xf32>, vector<64x32xf32>, vector<8x32xf32> -> vector<8x32xf32>
    %11 = vector.extract_strided_slice %2 {offsets = [7, 0], sizes = [1, 32], strides = [1, 1]} : vector<10x32xf32> to vector<1x32xf32>
    %12 = vector.broadcast %11 : vector<1x32xf32> to vector<8x32xf32>
    %13 = arith.addf %10, %12 : vector<8x32xf32>
    %14 = math.tanh %13 : vector<8x32xf32>
    %15 = vector.extract_strided_slice %8 {offsets = [0, 0], sizes = [4, 32], strides = [1, 1]} : vector<8x32xf32> to vector<4x32xf32>
    %16 = vector.extract_strided_slice %14 {offsets = [0, 0], sizes = [4, 32], strides = [1, 1]} : vector<8x32xf32> to vector<4x32xf32>
    %17 = vector.extract_strided_slice %8 {offsets = [4, 0], sizes = [4, 32], strides = [1, 1]} : vector<8x32xf32> to vector<4x32xf32>
    %18 = vector.extract_strided_slice %14 {offsets = [4, 0], sizes = [4, 32], strides = [1, 1]} : vector<8x32xf32> to vector<4x32xf32>
    %19 = tpu.concatenate %15, %16, %17, %18 in 0 : vector<4x32xf32>, vector<4x32xf32>, vector<4x32xf32>, vector<4x32xf32> -> vector<16x32xf32>
    %c0_6 = arith.constant 0 : index
    %c0_7 = arith.constant 0 : index
    %20 = vector.load %arg8[%c0_6, %c0_7] : memref<16x32xf32, #tpu.memory_space<vmem>>, vector<16x32xf32>
    tpu.vector_store %arg8[%c0_6, %c0_7], %19 {strides = array<i32>} : memref<16x32xf32, #tpu.memory_space<vmem>>, vector<16x32xf32>,
    %c0_8 = arith.constant 0 : index
    %c0_9 = arith.constant 0 : index
    %21 = vector.load %arg5[%c0_8, %c0_9] : memref<64x32xf32, #tpu.memory_space<vmem>>, vector<64x32xf32>
    %c0_10 = arith.constant 0 : index
    %c0_11 = arith.constant 0 : index
    %22 = vector.load %arg1[%c0_10, %c0_11] : memref<32x32xf32, #tpu.memory_space<vmem>>, vector<32x32xf32>
    %23 = vector.extract_strided_slice %21 {offsets = [0, 0], sizes = [32, 32], strides = [1, 1]} : vector<64x32xf32> to vector<32x32xf32>
    %cst_12 = arith.constant dense<0.000000e+00> : vector<16x32xf32>
    %24 = tpu.matmul %19, %23, %cst_12 {dimension_numbers = #tpu.dot_dimension_numbers<[1], [0], [0], [1], [0, 0, 1, 1], [], []>} : vector<16x32xf32>, vector<32x32xf32>, vector<16x32xf32> -> vector<16x32xf32>
    %25 = vector.extract_strided_slice %2 {offsets = [0, 0], sizes = [1, 32], strides = [1, 1]} : vector<10x32xf32> to vector<1x32xf32>
    %26 = vector.broadcast %25 : vector<1x32xf32> to vector<16x32xf32>
    %27 = arith.addf %24, %26 : vector<16x32xf32>
    %28 = vector.extract_strided_slice %2 {offsets = [1, 0], sizes = [1, 32], strides = [1, 1]} : vector<10x32xf32> to vector<1x32xf32>
    %29 = vector.extract_strided_slice %2 {offsets = [2, 0], sizes = [1, 32], strides = [1, 1]} : vector<10x32xf32> to vector<1x32xf32>
    %cst_13 = arith.constant dense<0.000000e+00> : vector<16xf32>
    %30 = vector.multi_reduction <add>, %27, %cst_13 [1] : vector<16x32xf32> to vector<16xf32>
    %31 = vector.shape_cast %30 : vector<16xf32> to vector<16x1xf32>
    %cst_14 = arith.constant 3.200000e+01 : f32
    %32 = vector.broadcast %cst_14 : f32 to vector<16x1xf32>
    %33 = arith.divf %31, %32 : vector<16x1xf32>
    %34 = vector.broadcast %33 : vector<16x1xf32> to vector<16x32xf32>
    %35 = arith.subf %27, %34 : vector<16x32xf32>
    %36 = arith.mulf %35, %35 : vector<16x32xf32>
    %cst_15 = arith.constant dense<0.000000e+00> : vector<16xf32>
    %37 = vector.multi_reduction <add>, %36, %cst_15 [1] : vector<16x32xf32> to vector<16xf32>
    %38 = vector.shape_cast %37 : vector<16xf32> to vector<16x1xf32>
    %cst_16 = arith.constant 3.200000e+01 : f32
    %39 = vector.broadcast %cst_16 : f32 to vector<16x1xf32>
    %40 = arith.divf %38, %39 : vector<16x1xf32>
    %41 = vector.broadcast %33 : vector<16x1xf32> to vector<16x32xf32>
    %42 = arith.subf %27, %41 : vector<16x32xf32>
    %cst_17 = arith.constant 9.99999974E-6 : f32
    %43 = vector.broadcast %cst_17 : f32 to vector<16x1xf32>
    %44 = arith.addf %40, %43 : vector<16x1xf32>
    %45 = math.rsqrt %44 : vector<16x1xf32>
    %46 = vector.broadcast %45 : vector<16x1xf32> to vector<16x32xf32>
    %47 = arith.mulf %42, %46 : vector<16x32xf32>
    %48 = vector.broadcast %28 : vector<1x32xf32> to vector<16x32xf32>
    %49 = arith.mulf %47, %48 : vector<16x32xf32>
    %50 = vector.broadcast %29 : vector<1x32xf32> to vector<16x32xf32>
    %51 = arith.addf %49, %50 : vector<16x32xf32>
    %52 = vector.extract_strided_slice %21 {offsets = [32, 0], sizes = [32, 32], strides = [1, 1]} : vector<64x32xf32> to vector<32x32xf32>
    %cst_18 = arith.constant dense<0.000000e+00> : vector<32x32xf32>
    %53 = tpu.matmul %22, %52, %cst_18 {dimension_numbers = #tpu.dot_dimension_numbers<[1], [0], [0], [1], [0, 0, 1, 1], [], []>} : vector<32x32xf32>, vector<32x32xf32>, vector<32x32xf32> -> vector<32x32xf32>
    %54 = vector.extract_strided_slice %2 {offsets = [3, 0], sizes = [1, 32], strides = [1, 1]} : vector<10x32xf32> to vector<1x32xf32>
    %55 = vector.broadcast %54 : vector<1x32xf32> to vector<32x32xf32>
    %56 = arith.addf %53, %55 : vector<32x32xf32>
    %57 = vector.extract_strided_slice %2 {offsets = [4, 0], sizes = [1, 32], strides = [1, 1]} : vector<10x32xf32> to vector<1x32xf32>
    %58 = vector.extract_strided_slice %2 {offsets = [5, 0], sizes = [1, 32], strides = [1, 1]} : vector<10x32xf32> to vector<1x32xf32>
    %cst_19 = arith.constant dense<0.000000e+00> : vector<32xf32>
    %59 = vector.multi_reduction <add>, %56, %cst_19 [1] : vector<32x32xf32> to vector<32xf32>
    %60 = vector.shape_cast %59 : vector<32xf32> to vector<32x1xf32>
    %cst_20 = arith.constant 3.200000e+01 : f32
    %61 = vector.broadcast %cst_20 : f32 to vector<32x1xf32>
    %62 = arith.divf %60, %61 : vector<32x1xf32>
    %63 = vector.broadcast %62 : vector<32x1xf32> to vector<32x32xf32>
    %64 = arith.subf %56, %63 : vector<32x32xf32>
    %65 = arith.mulf %64, %64 : vector<32x32xf32>
    %cst_21 = arith.constant dense<0.000000e+00> : vector<32xf32>
    %66 = vector.multi_reduction <add>, %65, %cst_21 [1] : vector<32x32xf32> to vector<32xf32>
    %67 = vector.shape_cast %66 : vector<32xf32> to vector<32x1xf32>
    %cst_22 = arith.constant 3.200000e+01 : f32
    %68 = vector.broadcast %cst_22 : f32 to vector<32x1xf32>
    %69 = arith.divf %67, %68 : vector<32x1xf32>
    %70 = vector.broadcast %62 : vector<32x1xf32> to vector<32x32xf32>
    %71 = arith.subf %56, %70 : vector<32x32xf32>
    %cst_23 = arith.constant 9.99999974E-6 : f32
    %72 = vector.broadcast %cst_23 : f32 to vector<32x1xf32>
    %73 = arith.addf %69, %72 : vector<32x1xf32>
    %74 = math.rsqrt %73 : vector<32x1xf32>
    %75 = vector.broadcast %74 : vector<32x1xf32> to vector<32x32xf32>
    %76 = arith.mulf %71, %75 : vector<32x32xf32>
    %77 = vector.broadcast %57 : vector<1x32xf32> to vector<32x32xf32>
    %78 = arith.mulf %76, %77 : vector<32x32xf32>
    %79 = vector.broadcast %58 : vector<1x32xf32> to vector<32x32xf32>
    %80 = arith.addf %78, %79 : vector<32x32xf32>
    %81 = tpu.transpose %80, [1, 0] : vector<32x32xf32> -> vector<32x32xf32>
    %cst_24 = arith.constant dense<0.000000e+00> : vector<16x32xf32>
    %82 = tpu.matmul %51, %81, %cst_24 {dimension_numbers = #tpu.dot_dimension_numbers<[1], [0], [0], [1], [0, 0, 1, 1], [], []>} : vector<16x32xf32>, vector<32x32xf32>, vector<16x32xf32> -> vector<16x32xf32>
    %cst_25 = arith.constant 0.176776692 : f32
    %83 = vector.broadcast %cst_25 : f32 to vector<16x32xf32>
    %84 = arith.mulf %82, %83 : vector<16x32xf32>
    %c0_26 = arith.constant 0 : index
    %c0_27 = arith.constant 0 : index
    %85 = vector.load %arg2[%c0_26, %c0_27] : memref<16x32xf32, #tpu.memory_space<vmem>>, vector<16x32xf32>
    %cst_28 = arith.constant 0.000000e+00 : f32
    %86 = vector.broadcast %cst_28 : f32 to vector<16x32xf32>
    %87 = arith.cmpf ogt, %85, %86 : vector<16x32xf32>
    %cst_29 = arith.constant -1.000000e+30 : f32
    %88 = vector.broadcast %cst_29 : f32 to vector<16x32xf32>
    %89 = arith.select %87, %84, %88 : vector<16x32xi1>, vector<16x32xf32>
    %cst_30 = arith.constant dense<0xFF800000> : vector<16xf32>
    %90 = vector.multi_reduction <maximumf>, %89, %cst_30 [1] : vector<16x32xf32> to vector<16xf32>
    %91 = vector.shape_cast %90 : vector<16xf32> to vector<16x1xf32>
    %cst_31 = arith.constant 2.000000e+00 : f32
    %92 = vector.broadcast %cst_31 : f32 to vector<16x1xf32>
    %93 = arith.mulf %92, %91 : vector<16x1xf32>
    %94 = vector.broadcast %93 : vector<16x1xf32> to vector<16x32xf32>
    %95 = arith.subf %84, %94 : vector<16x32xf32>
    %96 = math.exp %95 : vector<16x32xf32>
    %cst_32 = arith.constant 0.000000e+00 : f32
    %97 = vector.broadcast %cst_32 : f32 to vector<16x32xf32>
    %98 = arith.select %87, %96, %97 : vector<16x32xi1>, vector<16x32xf32>
    %cst_33 = arith.constant dense<0.000000e+00> : vector<16xf32>
    %99 = vector.multi_reduction <add>, %98, %cst_33 [1] : vector<16x32xf32> to vector<16xf32>
    %100 = vector.shape_cast %99 : vector<16xf32> to vector<16x1xf32>
    %cst_34 = arith.constant 1.000000e-03 : f32
    %101 = vector.broadcast %cst_34 : f32 to vector<16x1xf32>
    %102 = arith.addf %100, %101 : vector<16x1xf32>
    %103 = vector.broadcast %102 : vector<16x1xf32> to vector<16x32xf32>
    %104 = arith.divf %98, %103 : vector<16x32xf32>
    %cst_35 = arith.constant dense<0.000000e+00> : vector<16x32xf32>
    %105 = tpu.matmul %104, %22, %cst_35 {dimension_numbers = #tpu.dot_dimension_numbers<[1], [0], [0], [1], [0, 0, 1, 1], [], []>} : vector<16x32xf32>, vector<32x32xf32>, vector<16x32xf32> -> vector<16x32xf32>
    %c0_36 = arith.constant 0 : index
    %c0_37 = arith.constant 0 : index
    %106 = vector.load %arg9[%c0_36, %c0_37] : memref<16x32xf32, #tpu.memory_space<vmem>>, vector<16x32xf32>
    tpu.vector_store %arg9[%c0_36, %c0_37], %105 {strides = array<i32>} : memref<16x32xf32, #tpu.memory_space<vmem>>, vector<16x32xf32>,
    %c0_38 = arith.constant 0 : index
    %c0_39 = arith.constant 0 : index
    %107 = vector.load %arg7[%c0_38, %c0_39] : memref<4x32xf32, #tpu.memory_space<vmem>>, vector<4x32xf32>
    %108 = vector.extract_strided_slice %2 {offsets = [8, 0], sizes = [1, 1], strides = [1, 1]} : vector<10x32xf32> to vector<1x1xf32>
    %109 = vector.extract_strided_slice %2 {offsets = [9, 0], sizes = [1, 1], strides = [1, 1]} : vector<10x32xf32> to vector<1x1xf32>
    %110 = vector.extract_strided_slice %107 {offsets = [0, 0], sizes = [1, 32], strides = [1, 1]} : vector<4x32xf32> to vector<1x32xf32>
    %111 = vector.broadcast %110 : vector<1x32xf32> to vector<16x32xf32>
    %112 = arith.mulf %19, %111 : vector<16x32xf32>
    %cst_40 = arith.constant dense<0.000000e+00> : vector<16xf32>
    %113 = vector.multi_reduction <add>, %112, %cst_40 [1] : vector<16x32xf32> to vector<16xf32>
    %114 = vector.shape_cast %113 : vector<16xf32> to vector<16x1xf32>
    %115 = vector.extract_strided_slice %107 {offsets = [2, 0], sizes = [1, 32], strides = [1, 1]} : vector<4x32xf32> to vector<1x32xf32>
    %116 = vector.broadcast %115 : vector<1x32xf32> to vector<16x32xf32>
    %117 = arith.mulf %105, %116 : vector<16x32xf32>
    %cst_41 = arith.constant dense<0.000000e+00> : vector<16xf32>
    %118 = vector.multi_reduction <add>, %117, %cst_41 [1] : vector<16x32xf32> to vector<16xf32>
    %119 = vector.shape_cast %118 : vector<16xf32> to vector<16x1xf32>
    %120 = arith.addf %114, %119 : vector<16x1xf32>
    %121 = vector.broadcast %108 : vector<1x1xf32> to vector<16x1xf32>
    %122 = arith.addf %120, %121 : vector<16x1xf32>
    %123 = vector.extract_strided_slice %107 {offsets = [1, 0], sizes = [1, 32], strides = [1, 1]} : vector<4x32xf32> to vector<1x32xf32>
    %124 = vector.broadcast %123 : vector<1x32xf32> to vector<16x32xf32>
    %125 = arith.mulf %19, %124 : vector<16x32xf32>
    %cst_42 = arith.constant dense<0.000000e+00> : vector<16xf32>
    %126 = vector.multi_reduction <add>, %125, %cst_42 [1] : vector<16x32xf32> to vector<16xf32>
    %127 = vector.shape_cast %126 : vector<16xf32> to vector<16x1xf32>
    %128 = vector.extract_strided_slice %107 {offsets = [3, 0], sizes = [1, 32], strides = [1, 1]} : vector<4x32xf32> to vector<1x32xf32>
    %129 = vector.broadcast %128 : vector<1x32xf32> to vector<16x32xf32>
    %130 = arith.mulf %105, %129 : vector<16x32xf32>
    %cst_43 = arith.constant dense<0.000000e+00> : vector<16xf32>
    %131 = vector.multi_reduction <add>, %130, %cst_43 [1] : vector<16x32xf32> to vector<16xf32>
    %132 = vector.shape_cast %131 : vector<16xf32> to vector<16x1xf32>
    %133 = arith.addf %127, %132 : vector<16x1xf32>
    %134 = vector.broadcast %109 : vector<1x1xf32> to vector<16x1xf32>
    %135 = arith.addf %133, %134 : vector<16x1xf32>
    %136 = arith.maximumf %122, %135 : vector<16x1xf32>
    %137 = arith.subf %122, %136 : vector<16x1xf32>
    %138 = math.exp %137 : vector<16x1xf32>
    %139 = arith.subf %135, %136 : vector<16x1xf32>
    %140 = math.exp %139 : vector<16x1xf32>
    %141 = arith.addf %138, %140 : vector<16x1xf32>
    %142 = math.log %141 : vector<16x1xf32>
    %143 = arith.addf %136, %142 : vector<16x1xf32>
    %c0_44 = arith.constant 0 : index
    %c0_45 = arith.constant 0 : index
    %144 = vector.load %arg3[%c0_44, %c0_45] : memref<16x1xf32, #tpu.memory_space<vmem>>, vector<16x1xf32>
    %cst_46 = arith.constant 5.000000e-01 : f32
    %145 = vector.broadcast %cst_46 : f32 to vector<16x1xf32>
    %146 = arith.mulf %145, %144 : vector<16x1xf32>
    %147 = arith.subf %122, %143 : vector<16x1xf32>
    %148 = arith.addf %146, %147 : vector<16x1xf32>
    %149 = arith.subf %135, %143 : vector<16x1xf32>
    %150 = arith.addf %146, %149 : vector<16x1xf32>
    %151 = tpu.concatenate %148, %150 in 1 : vector<16x1xf32>, vector<16x1xf32> -> vector<16x2xf32>
    %c0_47 = arith.constant 0 : index
    %c0_48 = arith.constant 0 : index
    %152 = vector.load %arg10[%c0_47, %c0_48] : memref<16x2xf32, #tpu.memory_space<vmem>>, vector<16x2xf32>
    tpu.vector_store %arg10[%c0_47, %c0_48], %151 {strides = array<i32>} : memref<16x2xf32, #tpu.memory_space<vmem>>, vector<16x2xf32>,
    return
  }
}

</mosaic_0001>

<bundles_post_ra>
// kernel: eq.8
= control target key start
LH: loop header
LB: loop body
LE: loop exit
PB: predicated region body
PF: predicated region fallthrough
CT: control target
= control target key end

     0   :  { %s37_s8 = smov 4   ;;  %s38_s9 = smov 8   ;;  %vm7_vm0 = vcmask 31744   ;;  %vm13_vm1 = vcmask 130144   ;;  %vm19_vm2 = vcmask 97344   ;;  %vm25_vm3 = vcmask 64544   ;;  %s55_s0 = inlined_call_operand.vmem [shape: s32[4,4], index: 0, kind: input, shape index: {}]   ;;  %s56_s1 = inlined_call_operand.vmem [shape: s32[16], index: 1, kind: output, shape index: {}]  }
   0x1   :  { %v4_v0 = vld [vmem:[%s55_s0] sm:$0xf]  ;;  %s36_s0 = smov 12  }
   0x2   :  { %5 = vst [vmem:[#allocation1] sm:$0xf] %v4_v0 }
   0x9   :  { %v10_v1 = vld [vmem:[#allocation1 + $0x3] sm:$0x1]   ;;  %v22_v2 = vld [vmem:[#allocation1 + $0x1] sm:$0x1]   ;;  %v16_v3 = vld [vmem:[#allocation1 + $0x2] sm:$0x1]  }
   0xa   :  { %11 = vrot.lane.b32.xlu0 %v10_v1, %s36_s0  ;;  %23 = vrot.lane.b32.xlu1 %v22_v2, %s37_s8  ;;  %v6_v4 = vld [vmem:[#allocation1] sm:$0x1]  }
   0xb   :  { %8 = vst.msk [vmem:[#allocation0] sm:$0x1] %vm7_vm0, %v6_v4  }
  0x12   :  { %17 = vrot.lane.b32.xlu0 %v16_v3, %s38_s9 }
  0x7c   :  { %v12_v5 = vpop.permute.xlu0 %11   ;;  %v24_v6 = vpop.permute.xlu1 %23  }
  0x7d   :  { %14 = vst.msk [vmem:[#allocation0] sm:$0x1] %vm13_vm1, %v12_v5  }
  0x84   :  { %v18_v7 = vpop.permute.xlu0 %17  }
  0x85   :  { %20 = vst.msk [vmem:[#allocation0] sm:$0x1] %vm19_vm2, %v18_v7  }
  0x86   :  { %26 = vst.msk [vmem:[#allocation0] sm:$0x1] %vm25_vm3, %v24_v6  }
  0x8d   :  { %v29_v8 = vld [vmem:[#allocation0] sm:$0x1] }
  0x8e   :  { %32 = vst [vmem:[%s56_s1] sm:$0x1] %v29_v8 }

// kernel: eq.11
= control target key start
LH: loop header
LB: loop body
LE: loop exit
PB: predicated region body
PF: predicated region fallthrough
CT: control target
= control target key end

     0   :  { %s67_s10 = smov 28   ;;  %s68_s11 = smov 20   ;;  %vm3_vm0 = vcmask 31744   ;;  %vm9_vm1 = vcmask 261344   ;;  %vm15_vm2 = vcmask 228544   ;;  %vm21_vm3 = vcmask 195744   ;;  %s111_s0 = inlined_call_operand.vmem [shape: s32[8,4], index: 0, kind: input, shape index: {}]   ;;  %s112_s1 = inlined_call_operand.vmem [shape: s32[32], index: 1, kind: output, shape index: {}]  }
   0x1   :  { %v53_v0 = vld [vmem:[%s111_s0 + $0x7] sm:$0x1]   ;;  %v55_v1 = vld [vmem:[%s111_s0 + $0x5] sm:$0x1]   ;;  %v57_v2 = vld [vmem:[%s111_s0 + $0x3] sm:$0x1]  }
   0x2   :  { %7 = vrot.lane.b32.xlu0 %v53_v0, %s67_s10  ;;  %19 = vrot.lane.b32.xlu1 %v55_v1, %s68_s11  ;;  %s69_s14 = smov 12   ;;  %v54_v3 = vld [vmem:[%s111_s0 + $0x6] sm:$0x1]   ;;  %v56_v4 = vld [vmem:[%s111_s0 + $0x4] sm:$0x1]   ;;  %s70_s21 = smov 24  }
   0x3   :  { %31 = vrot.lane.b32.xlu2 %v57_v2, %s69_s14  ;;  %v58_v5 = vld [vmem:[%s111_s0 + $0x2] sm:$0x1]   ;;  %s71_s22 = smov 16   ;;  %s72_s23 = smov 8   ;;  %v59_v6 = vld [vmem:[%s111_s0 + $0x1] sm:$0x1]  }
   0x4   :  { %s73_s26 = smov 4   ;;  %v2_v7 = vld [vmem:[%s111_s0] sm:$0x1]   ;;  %vm27_vm4 = vcmask 162944   ;;  %vm33_vm5 = vcmask 130144   ;;  %vm39_vm6 = vcmask 97344  }
   0x5   :  { %4 = vst.msk [vmem:[#allocation0] sm:$0x1] %vm3_vm0, %v2_v7   ;;  %vm45_vm7 = vcmask 64544  }
   0xa   :  { %13 = vrot.lane.b32.xlu0 %v54_v3, %s70_s21  ;;  %25 = vrot.lane.b32.xlu1 %v56_v4, %s71_s22 }
   0xb   :  { %37 = vrot.lane.b32.xlu2 %v58_v5, %s72_s23 }
  0x12   :  { %43 = vrot.lane.b32.xlu0 %v59_v6, %s73_s26 }
  0x5d   :  { %v32_v8 = vpop.permute.xlu2 %31  }
  0x65   :  { %v38_v9 = vpop.permute.xlu2 %37  }
  0x74   :  { %v8_v10 = vpop.permute.xlu0 %7   ;;  %v20_v11 = vpop.permute.xlu1 %19  }
  0x75   :  { %10 = vst.msk [vmem:[#allocation0] sm:$0x1] %vm9_vm1, %v8_v10  }
  0x7c   :  { %v14_v12 = vpop.permute.xlu0 %13   ;;  %v26_v13 = vpop.permute.xlu1 %25  }
  0x7d   :  { %16 = vst.msk [vmem:[#allocation0] sm:$0x1] %vm15_vm2, %v14_v12  }
  0x7e   :  { %22 = vst.msk [vmem:[#allocation0] sm:$0x1] %vm21_vm3, %v20_v11  }
  0x7f   :  { %28 = vst.msk [vmem:[#allocation0] sm:$0x1] %vm27_vm4, %v26_v13  }
  0x80   :  { %34 = vst.msk [vmem:[#allocation0] sm:$0x1] %vm33_vm5, %v32_v8  }
  0x81   :  { %40 = vst.msk [vmem:[#allocation0] sm:$0x1] %vm39_vm6, %v38_v9  }
  0x84   :  { %v44_v14 = vpop.permute.xlu0 %43  }
  0x85   :  { %46 = vst.msk [vmem:[#allocation0] sm:$0x1] %vm45_vm7, %v44_v14  }
  0x8c   :  { %v49_v15 = vld [vmem:[#allocation0] sm:$0x1] }
  0x8d   :  { %52 = vst [vmem:[%s112_s1] sm:$0x1] %v49_v15 }

// kernel: operator_forward.1
= control target key start
LH: loop header
LB: loop body
LE: loop exit
PB: predicated region body
PF: predicated region fallthrough
CT: control target
= control target key end

     0   :  { %16 = vsyncpa [#allocation3], 0  ;;  %vm110_vm0 = vcmask 261120   ;;  %s1044_s0 = inlined_call_operand.vmem [shape: f32[8,64], index: 0, kind: input, shape index: {}]   ;;  %s1045_s1 = inlined_call_operand.vmem [shape: f32[32,32], index: 1, kind: input, shape index: {}]   ;;  %s1046_s2 = inlined_call_operand.vmem [shape: f32[16,32], index: 2, kind: input, shape index: {}]   ;;  %s1047_s3 = inlined_call_operand.vmem [shape: f32[16,1], index: 3, kind: input, shape index: {}]   ;;  %s1048_s4 = inlined_call_operand.vmem [shape: f32[128,32], index: 4, kind: input, shape index: {}]   ;;  %s1049_s5 = inlined_call_operand.vmem [shape: f32[64,32], index: 5, kind: input, shape index: {}]   ;;  %s1050_s6 = inlined_call_operand.vmem [shape: f32[10,32], index: 6, kind: input, shape index: {}]   ;;  %s1051_s7 = inlined_call_operand.vmem [shape: f32[4,32], index: 7, kind: input, shape index: {}]   ;;  %s1052_s8 = inlined_call_operand.hbm [shape: f32[16,32], index: 8, kind: output, shape index: {0}]   ;;  %s1053_s9 = inlined_call_operand.hbm [shape: f32[16,32], index: 9, kind: output, shape index: {1}]   ;;  %s1054_s10 = inlined_call_operand.vmem [shape: f32[16,2], index: 10, kind: output, shape index: {2}]  }
   0x1   :  { %v42_v0 = vld [vmem:[%s1048_s4 + $0x38] sm:$0xff]  ;;  %v41_v3 = vld [vmem:[%s1048_s4 + $0x30] sm:$0xff]  ;;  %v40_v6 = vld [vmem:[%s1048_s4 + $0x28] sm:$0xff] }
   0x2   :  { %v50_v1 = vld [vmem:[%s1048_s4 + $0x78] sm:$0xff]  ;;  %66 = vmatpush.msra.mxu0 %v42_v0  ;;  %v49_v4 = vld [vmem:[%s1048_s4 + $0x70] sm:$0xff]  ;;  %v48_v7 = vld [vmem:[%s1048_s4 + $0x68] sm:$0xff] }
   0x3   :  { %v120_v2 = vld [vmem:[%s1049_s5 + $0x38] sm:$0xff]  ;;  %88 = vmatpush.msra.mxu1 %v50_v1  ;;  %v119_v5 = vld [vmem:[%s1049_s5 + $0x30] sm:$0xff]  ;;  %v118_v8 = vld [vmem:[%s1049_s5 + $0x28] sm:$0xff] }
   0x4   :  { %237 = vmatpush.msra.mxu3 %v120_v2  ;;  %67 = vmatpush.msra.mxu0 %v41_v3  ;;  %v39_v9 = vld [vmem:[%s1048_s4 + $0x20] sm:$0xff]  ;;  %v38_v13 = vld [vmem:[%s1048_s4 + $0x18] sm:$0xff]  ;;  %v37_v15 = vld [vmem:[%s1048_s4 + $0x10] sm:$0xff] }
   0x5   :  { %89 = vmatpush.msra.mxu1 %v49_v4  ;;  %v47_v10 = vld [vmem:[%s1048_s4 + $0x60] sm:$0xff]  ;;  %v46_v14 = vld [vmem:[%s1048_s4 + $0x58] sm:$0xff] }
   0x6   :  { %238 = vmatpush.msra.mxu3 %v119_v5  ;;  %68 = vmatpush.msra.mxu0 %v40_v6  ;;  %v117_v11 = vld [vmem:[%s1049_s5 + $0x20] sm:$0xff] }
   0x7   :  { %90 = vmatpush.msra.mxu1 %v48_v7  ;;  %v121_v12 = vld [vmem:[%s1045_s1] sm:$0xff] }
   0x8   :  { %239 = vmatpush.msra.mxu3 %v118_v8  ;;  %69 = vmatpush.msra.mxu0 %v39_v9 }
   0x9   :  { %91 = vmatpush.msra.mxu1 %v47_v10 }
   0xa   :  { %240 = vmatpush.msra.mxu3 %v117_v11 }
   0xb   :  { %17 = vsyncpa [#allocation5], 0  ;;  %625 = vmatmul.msk.f32.vlgmr.msra.gmra.mxu3 %vm110_vm0, %v121_v12  ;;  %70 = vmatpush.msra.mxu0 %v38_v13  ;;  %v45_v16 = vld [vmem:[%s1048_s4 + $0x50] sm:$0xff]  ;;  %v36_v17 = vld [vmem:[%s1048_s4 + $0x8] sm:$0xff]  ;;  %vm54_vm1 = vcmask 523264   ;;  %vm107_vm2 = vcmask 1043456  }
   0xc   :  { %92 = vmatpush.msra.mxu1 %v46_v14  ;;  %v44_v18 = vld [vmem:[%s1048_s4 + $0x48] sm:$0xff]  ;;  %v35_v19 = vld [vmem:[%s1048_s4] sm:$0xff]  ;;  %v124_v23 = vld [vmem:[%s1045_s1 + $0x18] sm:$0xff]  ;;  %v737_v60 = vmov 32.0   ;;  %s738_s16 = smov [#allocation2]   ;;  %s587_s20 = sshll.u32 %s1052_s8, 4  ;;  %s588_s20 = int_to_ptr.hbm [resolvable:$true] %s587_s20 }
   0xd   :  { %71 = vmatpush.msra.mxu0 %v37_v15  ;;  %v43_v20 = vld [vmem:[%s1048_s4 + $0x40] sm:$0xff]  ;;  %v122_v22 = vld [vmem:[%s1045_s1 + $0x8] sm:$0xff]  ;;  %v123_v24 = vld [vmem:[%s1045_s1 + $0x10] sm:$0xff]  ;;  %s585_s17 = sshll.u32 %s738_s16, 4  ;;  %s739_s4 = smov 128   ;;  %s586_s17 = int_to_ptr.vmem [resolvable:$true] %s585_s17 }
   0xe   :  { %93 = vmatpush.msra.mxu1 %v45_v16  ;;  %v34_v21 = vld [vmem:[%s1044_s0] sm:$0xff]  ;;  %v116_v25 = vld [vmem:[%s1049_s5 + $0x18] sm:$0xff]  ;;  %v115_v26 = vld [vmem:[%s1049_s5 + $0x10] sm:$0xff]  ;;  %s740_s0 = smov 8   ;;  %s741_s23 = smov [#allocation4]  }
   0xf   :  { %72 = vmatpush.msra.mxu0 %v36_v17  ;;  %144 = vmatpush.msra.mxu2 %v116_v25  ;;  %v114_v27 = vld [vmem:[%s1049_s5 + $0x8] sm:$0xff]  ;;  %v113_v28 = vld [vmem:[%s1049_s5] sm:$0xff]  ;;  %s598_s24 = sshll.u32 %s741_s23, 4  ;;  %s600_s8 = sshll.u32 %s1053_s9, 4  ;;  %s599_s24 = int_to_ptr.vmem [resolvable:$true] %s598_s24  ;;  %s601_s8 = int_to_ptr.hbm [resolvable:$true] %s600_s8 }
  0x10   :  { %94 = vmatpush.msra.mxu1 %v44_v18  ;;  %v892_v29 = vld [vmem:[%s1050_s6] sm:$0xff]  ;;  %s742_s26 = smov 1  }
  0x11   :  { %73 = vmatpush.msra.mxu0 %v35_v19  ;;  %145 = vmatpush.msra.mxu2 %v115_v26  ;;  %v53_v30 = vperm.slane %v892_v29, 6  ;;  %v79_v31 = vperm.slane %v892_v29, 7  ;;  %v212_v37 = vperm.slane %v892_v29, 3  ;;  %v900_v38 = vld [vmem:[%s1051_s7] sm:$0xf]  ;;  %v125_v6 = vperm.slane %v892_v29, 0 }
  0x12   :  { %95 = vmatpush.msra.mxu1 %v43_v20  ;;  %621 = vmatmul.msk.f32.vlgmr.msra.gmra.mxu0 %vm54_vm1, %v34_v21  ;;  %v487_v42 = vperm.slane %v900_v38, 0  ;;  %v510_v43 = vperm.slane %v900_v38, 1 }
  0x13   :  { %622 = vmatmul.msk.f32.vlgmr.msra.gmra.mxu1 %vm54_vm1, %v34_v21  ;;  %626 = vmatmul.msk.f32.gmra.mxu3 %vm110_vm0, %v122_v22 }
  0x14   :  { %473 = vmatpush.msrb.mxu0 %v124_v23  ;;  %637 = vmatpush.msrb.mxu1 %v124_v23 }
  0x15   :  { %146 = vmatpush.msra.mxu2 %v114_v27 }
  0x16   :  { %474 = vmatpush.msrb.mxu0 %v123_v24  ;;  %638 = vmatpush.msrb.mxu1 %v123_v24 }
  0x17   :  { %147 = vmatpush.msra.mxu2 %v113_v28 }
  0x18   :  { %475 = vmatpush.msrb.mxu0 %v122_v22  ;;  %639 = vmatpush.msrb.mxu1 %v122_v22 }
  0x1a   :  { %476 = vmatpush.msrb.mxu0 %v121_v12  ;;  %640 = vmatpush.msrb.mxu1 %v121_v12 }
  0x1b   :  { %627 = vmatmul.msk.f32.gmra.mxu3 %vm110_vm0, %v123_v24 }
  0x23   :  { %628 = vmatmul.msk.f32.gmra.mxu3 %vm110_vm0, %v124_v23 }
  0x8e   :  { %v242_v32 = vpop.f32.mrf.mxu3 }
  0x8f   :  { %v75_v33 = vpop.f32.mrf.mxu0  ;;  %v243_v48 = vadd.f32 %v242_v32, %v212_v37 }
  0x90   :  { %v76_v34 = vadd.f32 %v75_v33, %v53_v30  ;;  %v97_v35 = vpop.f32.mrf.mxu1 }
  0x91   :  { %v98_v36 = vadd.f32 %v97_v35, %v79_v31  ;;  %v254_v54 = vsel %vm110_vm0, %v243_v48, 0.0 }
  0x92   :  { %647 = vtanh.f32 %v76_v34 }
  0x93   :  { %649 = vtanh.f32 %v98_v36 }
  0x94   :  { %651 = vrcp.f32 %v737_v60 }
  0x96   :  { %v245_v39 = vpop.f32.mrf.mxu3 }
  0x97   :  { %v246_v40 = vadd.f32 %v245_v39, %v212_v37 }
  0x98   :  { %v648_v41 = vpop.eup %647 }
  0x99   :  { %v650_v44 = vpop.eup %649  ;;  %v257_v45 = vsel %vm110_vm0, %v246_v40, 0.0  ;;  %v105_v46 = vrot.slane %v648_v41, 4 }
  0x9a   :  { %258 = vadd.xlane.f32.xlu1 %v257_v45  ;;  %v102_v47 = vrot.slane %v650_v44, 4  ;;  %v652_v61 = vpop.eup %651 }
  0x9b   :  { %v109_v49 = vsel %vm107_vm2, %v105_v46, %v650_v44  ;;  %v162_v62 = vmul.f32 32.0, %v652_v61  ;;  %vm166_vm3 = vweird.f32 %v652_v61 }
  0x9c   :  { %v905_v50 = vsel %vm107_vm2, %v648_v41, %v102_v47  ;;  %112 = vst.msk [vmem:[#allocation2 + $0x8] sm:$0xff] %vm110_vm0, %v109_v49  ;;  %v910_v51 = vmul.f32 %v487_v42, %v109_v49  ;;  %v914_v52 = vmul.f32 %v510_v43, %v109_v49 }
  0x9d   :  { %111 = vst.msk [vmem:[#allocation2] sm:$0xff] %vm110_vm0, %v905_v50  ;;  %623 = vmatmul.msk.f32.vlgmr.msra.gmra.mxu2 %vm110_vm0, %v905_v50  ;;  %v163_v63 = vsub.f32 1.0, %v162_v62 }
  0x9e   :  { %v248_v53 = vpop.f32.mrf.mxu3  ;;  %593 = dma.vmem_to_hbm [thread:$0]  %s586_s17, 256, %s588_s20, [#allocation3], %s739_s4, %s739_s4, %s740_s0  }
  0x9f   :  { %v249_v58 = vadd.f32 %v248_v53, %v212_v37  ;;  %v164_v1 = vmul.f32 %v652_v61, %v163_v63 }
  0xa1   :  { %v260_v59 = vsel %vm110_vm0, %v249_v58, 0.0  ;;  %v165_v2 = vadd.f32 %v652_v61, %v164_v1 }
  0xa2   :  { %255 = vadd.xlane.f32.xlu1 %v254_v54 }
  0xa3   :  { %v924_v3 = vsel %vm166_vm3, %v652_v61, %v165_v2 }
  0xa5   :  { %624 = vmatmul.msk.f32.gmra.mxu2 %vm110_vm0, %v109_v49 }
  0xa6   :  { %v251_v55 = vpop.f32.mrf.mxu3 }
  0xa7   :  { %v252_v56 = vadd.f32 %v251_v55, %v212_v37 }
  0xa9   :  { %v263_v57 = vsel %vm110_vm0, %v252_v56, 0.0 }
  0xaa   :  { %264 = vadd.xlane.f32.xlu0 %v263_v57 }
  0xb2   :  { %261 = vadd.xlane.f32.xlu0 %v260_v59 }
 0x10d   :  { %v259_v0 = vpop.xlane.xlu1 %258 }
 0x10e   :  { %v267_v18 = vmul.f32 %v259_v0, %v924_v3 }
 0x110   :  { %v945_v24 = vsub.f32 %v246_v40, %v267_v18 }
 0x112   :  { %v275_v28 = vmul.f32 %v945_v24, %v945_v24 }
 0x114   :  { %v281_v30 = vsel %vm110_vm0, %v275_v28, 0.0 }
 0x115   :  { %v256_v4 = vpop.xlane.xlu1 %255 }
 0x116   :  { %v266_v8 = vmul.f32 %v256_v4, %v924_v3 }
 0x118   :  { %v934_v14 = vsub.f32 %v243_v48, %v266_v8 }
 0x11a   :  { %v274_v21 = vmul.f32 %v934_v14, %v934_v14 }
 0x11c   :  { %v278_v27 = vsel %vm110_vm0, %v274_v21, 0.0 }
 0x11d   :  { %v265_v5 = vpop.xlane.xlu0 %264 }
 0x11e   :  { %v269_v7 = vmul.f32 %v265_v5, %v924_v3 }
 0x120   :  { %v929_v9 = vsub.f32 %v252_v56, %v269_v7  ;;  %v149_v10 = vpop.f32.mrf.mxu2 }
 0x121   :  { %v150_v11 = vadd.f32 %v149_v10, %v125_v6 }
 0x122   :  { %v277_v12 = vmul.f32 %v929_v9, %v929_v9 }
 0x123   :  { %v155_v13 = vsel %vm110_vm0, %v150_v11, 0.0 }
 0x124   :  { %156 = vadd.xlane.f32.xlu2 %v155_v13  ;;  %v287_v15 = vsel %vm110_vm0, %v277_v12, 0.0  ;;  %v347_v12 = vperm.slane %v892_v29, 5 }
 0x125   :  { %288 = vadd.xlane.f32.xlu0 %v287_v15  ;;  %v262_v16 = vpop.xlane.xlu0 %261 }
 0x126   :  { %v268_v17 = vmul.f32 %v262_v16, %v924_v3 }
 0x128   :  { %v939_v19 = vsub.f32 %v249_v58, %v268_v17  ;;  %v152_v20 = vpop.f32.mrf.mxu2 }
 0x129   :  { %v153_v22 = vadd.f32 %v152_v20, %v125_v6  ;;  %v342_v6 = vperm.slane %v892_v29, 4 }
 0x12a   :  { %v276_v23 = vmul.f32 %v939_v19, %v939_v19 }
 0x12b   :  { %v158_v25 = vsel %vm110_vm0, %v153_v22, 0.0 }
 0x12c   :  { %159 = vadd.xlane.f32.xlu2 %v158_v25  ;;  %v284_v26 = vsel %vm110_vm0, %v276_v23, 0.0 }
 0x12d   :  { %285 = vadd.xlane.f32.xlu1 %v284_v26  ;;  %279 = vadd.xlane.f32.xlu0 %v278_v27 }
 0x134   :  { %282 = vadd.xlane.f32.xlu2 %v281_v30 }
 0x197   :  { %v157_v31 = vpop.xlane.xlu2 %156 }
 0x198   :  { %v168_v32 = vmul.f32 %v924_v3, %v157_v31  ;;  %v289_v33 = vpop.xlane.xlu0 %288 }
 0x199   :  { %v293_v34 = vmul.f32 %v289_v33, %v924_v3 }
 0x19a   :  { %v955_v35 = vsub.f32 %v150_v11, %v168_v32 }
 0x19b   :  { %v297_v36 = vadd.f32 1e-05, %v293_v34 }
 0x19c   :  { %v172_v37 = vmul.f32 %v955_v35, %v955_v35 }
 0x19d   :  { %653 = vrsqrt.f32 %v297_v36  ;;  %vm334_vm5 = vweird.f32 %v297_v36 }
 0x19e   :  { %v174_v39 = vsel %vm110_vm0, %v172_v37, 0.0 }
 0x19f   :  { %175 = vadd.xlane.f32.xlu1 %v174_v39  ;;  %v160_v40 = vpop.xlane.xlu2 %159 }
 0x1a0   :  { %v169_v41 = vmul.f32 %v924_v3, %v160_v40  ;;  %v280_v44 = vpop.xlane.xlu0 %279  ;;  %v286_v45 = vpop.xlane.xlu1 %285 }
 0x1a1   :  { %v290_v46 = vmul.f32 %v280_v44, %v924_v3  ;;  %v292_v47 = vmul.f32 %v286_v45, %v924_v3 }
 0x1a2   :  { %v963_v48 = vsub.f32 %v153_v22, %v169_v41 }
 0x1a3   :  { %v654_v49 = vpop.eup %653  ;;  %v294_v53 = vadd.f32 1e-05, %v290_v46  ;;  %v296_v54 = vadd.f32 1e-05, %v292_v47 }
 0x1a4   :  { %v329_v55 = vmul.f32 %v654_v49, %v297_v36  ;;  %v173_v56 = vmul.f32 %v963_v48, %v963_v48  ;;  %vm335_vm4 = vweird.f32 %v654_v49 }
 0x1a5   :  { %655 = vrsqrt.f32 %v294_v53  ;;  %vm336_vm6 = vmor %vm334_vm5, %vm335_vm4  ;;  %vm324_vm8 = vweird.f32 %v296_v54  ;;  %vm304_vm11 = vweird.f32 %v294_v53 }
 0x1a6   :  { %v330_v57 = vmul.f32 %v654_v49, %v329_v55  ;;  %657 = vrsqrt.f32 %v296_v54  ;;  %v177_v58 = vsel %vm110_vm0, %v173_v56, 0.0 }
 0x1a7   :  { %178 = vadd.xlane.f32.xlu2 %v177_v58  ;;  %v283_v59 = vpop.xlane.xlu2 %282 }
 0x1a8   :  { %v331_v60 = vmul.f32 0.5, %v330_v57  ;;  %v291_v61 = vmul.f32 %v283_v59, %v924_v3 }
 0x1aa   :  { %v332_v62 = vsub.f32 1.5, %v331_v60  ;;  %v295_v63 = vadd.f32 1e-05, %v291_v61  ;;  %v206_v61 = vperm.slane %v892_v29, 1 }
 0x1ab   :  { %v656_v0 = vpop.eup %655 }
 0x1ac   :  { %v658_v1 = vpop.eup %657  ;;  %v333_v2 = vmul.f32 %v654_v49, %v332_v62  ;;  %v299_v4 = vmul.f32 %v656_v0, %v294_v53  ;;  %659 = vrsqrt.f32 %v295_v63  ;;  %vm305_vm10 = vweird.f32 %v656_v0 }
 0x1ad   :  { %v319_v5 = vmul.f32 %v658_v1, %v296_v54  ;;  %vm325_vm7 = vweird.f32 %v658_v1  ;;  %vm306_vm13 = vmor %vm304_vm11, %vm305_vm10  ;;  %vm314_vm14 = vweird.f32 %v295_v63 }
 0x1ae   :  { %v337_v7 = vsel %vm336_vm6, %v654_v49, %v333_v2  ;;  %v300_v8 = vmul.f32 %v656_v0, %v299_v4  ;;  %vm326_vm9 = vmor %vm324_vm8, %vm325_vm7 }
 0x1af   :  { %v320_v10 = vmul.f32 %v658_v1, %v319_v5  ;;  %v341_v11 = vmul.f32 %v337_v7, %v929_v9 }
 0x1b0   :  { %v301_v13 = vmul.f32 0.5, %v300_v8 }
 0x1b1   :  { %v321_v15 = vmul.f32 0.5, %v320_v10  ;;  %v346_v16 = vmul.f32 %v342_v6, %v341_v11 }
 0x1b2   :  { %v660_v17 = vpop.eup %659  ;;  %v302_v18 = vsub.f32 1.5, %v301_v13 }
 0x1b3   :  { %v322_v20 = vsub.f32 1.5, %v321_v15  ;;  %v309_v21 = vmul.f32 %v660_v17, %v295_v63  ;;  %v351_v22 = vadd.f32 %v347_v12, %v346_v16  ;;  %vm315_vm12 = vweird.f32 %v660_v17 }
 0x1b4   :  { %v303_v26 = vmul.f32 %v656_v0, %v302_v18  ;;  %vm316_vm15 = vmor %vm314_vm14, %vm315_vm12 }
 0x1b5   :  { %v323_v23 = vmul.f32 %v658_v1, %v322_v20  ;;  %v310_v25 = vmul.f32 %v660_v17, %v309_v21  ;;  %629 = vmatpush.xpose.msk.msrb.mxu2 %vm110_vm0, %v351_v22  ;;  %v488_v21 = vmul.f32 %v487_v42, %v905_v50 }
 0x1b6   :  { %v307_v32 = vsel %vm306_vm13, %v656_v0, %v303_v26 }
 0x1b7   :  { %v327_v9 = vsel %vm326_vm9, %v658_v1, %v323_v23  ;;  %v311_v27 = vmul.f32 0.5, %v310_v25  ;;  %v338_v39 = vmul.f32 %v307_v32, %v934_v14  ;;  %v490_v22 = vsel %vm110_vm0, %v488_v21, 0.0 }
 0x1b8   :  { %v340_v28 = vmul.f32 %v327_v9, %v939_v19 }
 0x1b9   :  { %v312_v30 = vsub.f32 1.5, %v311_v27  ;;  %v343_v19 = vmul.f32 %v342_v6, %v338_v39 }
 0x1ba   :  { %v345_v31 = vmul.f32 %v342_v6, %v340_v28 }
 0x1bb   :  { %v313_v33 = vmul.f32 %v660_v17, %v312_v30  ;;  %v348_v44 = vadd.f32 %v347_v12, %v343_v19 }
 0x1bc   :  { %v350_v34 = vadd.f32 %v347_v12, %v345_v31 }
 0x1bd   :  { %v317_v36 = vsel %vm316_vm15, %v660_v17, %v313_v33 }
 0x1be   :  { %630 = vmatpush.xpose.msk.msrb.mxu2 %vm110_vm0, %v350_v34  ;;  %v339_v37 = vmul.f32 %v317_v36, %v945_v24 }
 0x1c0   :  { %v344_v40 = vmul.f32 %v342_v6, %v339_v37  ;;  %v493_v37 = vsel %vm110_vm0, %v910_v51, 0.0 }
 0x1c2   :  { %v349_v41 = vadd.f32 %v347_v12, %v344_v40  ;;  %v511_v40 = vmul.f32 %v510_v43, %v905_v50 }
 0x1c4   :  { %631 = vmatpush.xpose.msk.msrb.mxu2 %vm110_vm0, %v349_v41  ;;  %v513_v41 = vsel %vm110_vm0, %v511_v40, 0.0 }
 0x1c8   :  { %632 = vmatpush.xpose.msk.msrb.mxu2 %vm110_vm0, %v348_v44 }
 0x212   :  { %v176_v45 = vpop.xlane.xlu1 %175 }
 0x213   :  { %v180_v46 = vmul.f32 %v176_v45, %v924_v3 }
 0x215   :  { %v182_v47 = vadd.f32 1e-05, %v180_v46 }
 0x217   :  { %661 = vrsqrt.f32 %v182_v47  ;;  %vm190_vm2 = vweird.f32 %v182_v47 }
 0x21a   :  { %v179_v49 = vpop.xlane.xlu2 %178 }
 0x21b   :  { %v181_v53 = vmul.f32 %v179_v49, %v924_v3  ;;  %v209_v3 = vperm.slane %v892_v29, 2  ;;  %v395_v29 = vld [vmem:[%s1046_s2] sm:$0xff] }
 0x21c   :  { %vm397_vm7 = vcmp.gt.f32.partialorder %v395_v29, 0.0 }
 0x21d   :  { %v662_v54 = vpop.eup %661  ;;  %v183_v24 = vadd.f32 1e-05, %v181_v53 }
 0x21e   :  { %v185_v55 = vmul.f32 %v662_v54, %v182_v47  ;;  %vm191_vm1 = vweird.f32 %v662_v54 }
 0x21f   :  { %663 = vrsqrt.f32 %v183_v24  ;;  %vm192_vm3 = vmor %vm190_vm2, %vm191_vm1  ;;  %vm200_vm5 = vweird.f32 %v183_v24  ;;  %vm578_vm2 = vcmask 15360  }
 0x220   :  { %v186_v14 = vmul.f32 %v662_v54, %v185_v55 }
 0x222   :  { %v187_v56 = vmul.f32 0.5, %v186_v14 }
 0x224   :  { %v188_v57 = vsub.f32 1.5, %v187_v56 }
 0x225   :  { %v664_v58 = vpop.eup %663 }
 0x226   :  { %v189_v59 = vmul.f32 %v662_v54, %v188_v57  ;;  %v195_v60 = vmul.f32 %v664_v58, %v183_v24  ;;  %vm201_vm4 = vweird.f32 %v664_v58 }
 0x227   :  { %vm202_vm6 = vmor %vm200_vm5, %vm201_vm4 }
 0x228   :  { %v193_v62 = vsel %vm192_vm3, %v662_v54, %v189_v59  ;;  %v196_v63 = vmul.f32 %v664_v58, %v195_v60 }
 0x229   :  { %v204_v0 = vmul.f32 %v193_v62, %v955_v35 }
 0x22a   :  { %v197_v1 = vmul.f32 0.5, %v196_v63 }
 0x22b   :  { %v207_v2 = vmul.f32 %v206_v61, %v204_v0 }
 0x22c   :  { %v198_v4 = vsub.f32 1.5, %v197_v1 }
 0x22d   :  { %v210_v5 = vadd.f32 %v209_v3, %v207_v2 }
 0x22e   :  { %v199_v6 = vmul.f32 %v664_v58, %v198_v4  ;;  %v496_v4 = vperm.slane %v900_v38, 2 }
 0x22f   :  { %633 = vmatmul.msk.f32.vlgmr.msrb.gmra.mxu2 %vm110_vm0, %v210_v5 }
 0x230   :  { %v203_v7 = vsel %vm202_vm6, %v664_v58, %v199_v6 }
 0x231   :  { %v205_v8 = vmul.f32 %v203_v7, %v963_v48  ;;  %v396_v48 = vld [vmem:[%s1046_s2 + $0x8] sm:$0xff] }
 0x232   :  { %vm398_vm8 = vcmp.gt.f32.partialorder %v396_v48, 0.0 }
 0x233   :  { %v208_v10 = vmul.f32 %v206_v61, %v205_v8  ;;  %v519_v8 = vperm.slane %v900_v38, 3 }
 0x235   :  { %v211_v11 = vadd.f32 %v209_v3, %v208_v10 }
 0x237   :  { %634 = vmatmul.msk.f32.gmra.mxu2 %vm110_vm0, %v211_v11 }
 0x2b2   :  { %v387_v35 = vpop.f32.mrf.mxu2 }
 0x2b3   :  { %v393_v12 = vmul.f32 0.17677669, %v387_v35 }
 0x2b5   :  { %v399_v13 = vsel %vm397_vm7, %v393_v12, -1e+30 }
 0x2b6   :  { %v401_v15 = vsel %vm110_vm0, %v399_v13, -inf  ;;  %v516_v13 = vsel %vm110_vm0, %v914_v52, 0.0 }
 0x2b7   :  { %402 = vmax.xlane.f32.xlu0 %v401_v15 }
 0x2ba   :  { %v390_v16 = vpop.f32.mrf.mxu2 }
 0x2bb   :  { %v394_v17 = vmul.f32 0.17677669, %v390_v16 }
 0x2bd   :  { %v400_v18 = vsel %vm398_vm8, %v394_v17, -1e+30 }
 0x2be   :  { %v404_v20 = vsel %vm110_vm0, %v400_v18, -inf }
 0x2bf   :  { %405 = vmax.xlane.f32.xlu1 %v404_v20  ;;  %v52_v20 = vld [vmem:[%s1050_s6 + $0x8] sm:$0x3] }
 0x2c7   :  { %491 = vadd.xlane.f32.xlu1 %v490_v22  ;;  %v530_v22 = vperm.slane %v52_v20, 1 }
 0x32a   :  { %v403_v23 = vpop.xlane.xlu0 %402 }
 0x32b   :  { %v407_v25 = vmul.f32 2.0, %v403_v23 }
 0x32d   :  { %v409_v26 = vsub.f32 %v393_v12, %v407_v25  ;;  %v507_v25 = vperm.slane %v52_v20, 0 }
 0x32f   :  { %v411_v9 = vmul.f32 1.442695, %v409_v26 }
 0x331   :  { %665 = vpow2.f32 %v411_v9 }
 0x332   :  { %v406_v27 = vpop.xlane.xlu1 %405 }
 0x333   :  { %v408_v28 = vmul.f32 2.0, %v406_v27 }
 0x335   :  { %v410_v30 = vsub.f32 %v394_v17, %v408_v28 }
 0x337   :  { %v666_v31 = vpop.eup %665  ;;  %v413_v32 = vmul.f32 1.442695, %v410_v30 }
 0x338   :  { %v415_v33 = vsel %vm397_vm7, %v666_v31, 0.0 }
 0x339   :  { %667 = vpow2.f32 %v413_v32  ;;  %v417_v34 = vsel %vm110_vm0, %v415_v33, 0.0 }
 0x33a   :  { %418 = vadd.xlane.f32.xlu2 %v417_v34  ;;  %v492_v16 = vpop.xlane.xlu1 %491 }
 0x33f   :  { %v668_v42 = vpop.eup %667 }
 0x340   :  { %v416_v36 = vsel %vm398_vm8, %v668_v42, 0.0 }
 0x341   :  { %v420_v39 = vsel %vm110_vm0, %v416_v36, 0.0 }
 0x342   :  { %494 = vadd.xlane.f32.xlu2 %v493_v37  ;;  %421 = vadd.xlane.f32.xlu0 %v420_v39 }
 0x34a   :  { %514 = vadd.xlane.f32.xlu2 %v513_v41 }
 0x3ad   :  { %v419_v19 = vpop.xlane.xlu2 %418 }
 0x3ae   :  { %v423_v44 = vadd.f32 0.001, %v419_v19 }
 0x3b0   :  { %669 = vrcp.f32 %v423_v44  ;;  %v436_v53 = vand.u32 2147483648, %v423_v44  ;;  %v434_v24 = vand.u32 2147483647, %v423_v44  ;;  %vm430_vm10 = vweird.f32 %v423_v44 }
 0x3b2   :  { %v437_v43 = vor.u32 1.1754944e-38, %v436_v53  ;;  %vm435_vm12 = vcmp.eq.f32.partialorder %v434_v24, 8.507059e+37 }
 0x3b5   :  { %v422_v45 = vpop.xlane.xlu0 %421  ;;  %v495_v38 = vpop.xlane.xlu2 %494 }
 0x3b6   :  { %v670_v46 = vpop.eup %669  ;;  %v424_v47 = vadd.f32 0.001, %v422_v45 }
 0x3b7   :  { %v426_v49 = vmul.f32 %v670_v46, %v423_v44  ;;  %vm431_vm9 = vweird.f32 %v670_v46 }
 0x3b8   :  { %671 = vrcp.f32 %v424_v47  ;;  %vm432_vm11 = vmor %vm430_vm10, %vm431_vm9  ;;  %v451_v60 = vand.u32 2147483648, %v424_v47  ;;  %v449_v62 = vand.u32 2147483647, %v424_v47  ;;  %vm445_vm14 = vweird.f32 %v424_v47 }
 0x3b9   :  { %v427_v51 = vsub.f32 1.0, %v426_v49 }
 0x3ba   :  { %v452_v0 = vor.u32 1.1754944e-38, %v451_v60  ;;  %vm450_vm1 = vcmp.eq.f32.partialorder %v449_v62, 8.507059e+37 }
 0x3bb   :  { %v428_v54 = vmul.f32 %v670_v46, %v427_v51 }
 0x3bd   :  { %v429_v55 = vadd.f32 %v670_v46, %v428_v54  ;;  %v515_v17 = vpop.xlane.xlu2 %514 }
 0x3be   :  { %v672_v14 = vpop.eup %671 }
 0x3bf   :  { %v441_v50 = vmul.f32 %v672_v14, %v424_v47  ;;  %v433_v56 = vsel %vm432_vm11, %v670_v46, %v429_v55  ;;  %vm446_vm13 = vweird.f32 %v672_v14 }
 0x3c0   :  { %v438_v57 = vsel %vm435_vm12, %v437_v43, %v433_v56  ;;  %vm447_vm15 = vmor %vm445_vm14, %vm446_vm13 }
 0x3c1   :  { %v442_v58 = vsub.f32 1.0, %v441_v50  ;;  %v439_v59 = vmul.f32 %v438_v57, %v415_v33 }
 0x3c3   :  { %v443_v61 = vmul.f32 %v672_v14, %v442_v58  ;;  %635 = vmatmul.msk.f32.vlgmr.msrb.gmra.mxu0 %vm110_vm0, %v439_v59 }
 0x3c5   :  { %v444_v63 = vadd.f32 %v672_v14, %v443_v61  ;;  %v555_v61 = vld [vmem:[%s1047_s3] sm:$0xff] }
 0x3c7   :  { %v448_v3 = vsel %vm447_vm15, %v672_v14, %v444_v63  ;;  %v556_v14 = vld [vmem:[%s1047_s3 + $0x8] sm:$0xff] }
 0x3c8   :  { %v453_v1 = vsel %vm450_vm1, %v452_v0, %v448_v3  ;;  %v558_v56 = vmul.f32 0.5, %v556_v14  ;;  %v557_v3 = vmul.f32 0.5, %v555_v61 }
 0x3c9   :  { %v454_v2 = vmul.f32 %v453_v1, %v416_v36 }
 0x3cb   :  { %636 = vmatmul.msk.f32.vlgmr.msrb.gmra.mxu1 %vm110_vm0, %v454_v2 }
 0x440   :  { %v478_v5 = vpop.f32.mrf.mxu0 }
 0x441   :  { %484 = vst.msk [vmem:[#allocation4] sm:$0xff] %vm110_vm0, %v478_v5  ;;  %v497_v6 = vmul.f32 %v496_v4, %v478_v5  ;;  %v520_v15 = vmul.f32 %v519_v8, %v478_v5 }
 0x443   :  { %v499_v7 = vsel %vm110_vm0, %v497_v6, 0.0  ;;  %v522_v48 = vsel %vm110_vm0, %v520_v15, 0.0 }
 0x444   :  { %500 = vadd.xlane.f32.xlu0 %v499_v7 }
 0x448   :  { %v481_v10 = vpop.f32.mrf.mxu1 }
 0x449   :  { %485 = vst.msk [vmem:[#allocation4 + $0x8] sm:$0xff] %vm110_vm0, %v481_v10  ;;  %v498_v11 = vmul.f32 %v496_v4, %v481_v10  ;;  %v521_v29 = vmul.f32 %v519_v8, %v481_v10 }
 0x44a   :  { %606 = dma.vmem_to_hbm [thread:$0]  %s599_s24, 256, %s601_s8, [#allocation5], %s739_s4, %s739_s4, %s740_s0  }
 0x44b   :  { %v525_v35 = vsel %vm110_vm0, %v521_v29, 0.0  ;;  %v502_v12 = vsel %vm110_vm0, %v498_v11, 0.0  ;;  %vm575_vm0 = vcmask 7168  }
 0x44c   :  { %526 = vadd.xlane.f32.xlu2 %v525_v35  ;;  %503 = vadd.xlane.f32.xlu1 %v502_v12 }
 0x44d   :  { %517 = vadd.xlane.f32.xlu0 %v516_v13 }
 0x454   :  { %523 = vadd.xlane.f32.xlu1 %v522_v48 }
 0x4b7   :  { %v501_v18 = vpop.xlane.xlu0 %500 }
 0x4b8   :  { %v505_v31 = vadd.f32 %v501_v18, %v492_v16 }
 0x4ba   :  { %v508_v39 = vadd.f32 %v507_v25, %v505_v31 }
 0x4bf   :  { %v504_v21 = vpop.xlane.xlu1 %503  ;;  %v527_v23 = vpop.xlane.xlu2 %526 }
 0x4c0   :  { %v506_v26 = vadd.f32 %v504_v21, %v495_v38  ;;  %v518_v9 = vpop.xlane.xlu0 %517 }
 0x4c1   :  { %v529_v52 = vadd.f32 %v527_v23, %v518_v9 }
 0x4c2   :  { %v509_v27 = vadd.f32 %v507_v25, %v506_v26 }
 0x4c3   :  { %v532_v28 = vadd.f32 %v530_v22, %v529_v52 }
 0x4c5   :  { %v534_v30 = vmax.f32 %v509_v27, %v532_v28 }
 0x4c7   :  { %v536_v32 = vsub.f32 %v509_v27, %v534_v30  ;;  %v542_v33 = vsub.f32 %v532_v28, %v534_v30  ;;  %v524_v34 = vpop.xlane.xlu1 %523 }
 0x4c8   :  { %v528_v42 = vadd.f32 %v524_v34, %v515_v17 }
 0x4c9   :  { %v539_v36 = vmul.f32 1.442695, %v536_v32  ;;  %v545_v37 = vmul.f32 1.442695, %v542_v33 }
 0x4ca   :  { %v531_v40 = vadd.f32 %v530_v22, %v528_v42 }
 0x4cb   :  { %673 = vpow2.f32 %v539_v36 }
 0x4cc   :  { %675 = vpow2.f32 %v545_v37  ;;  %v533_v41 = vmax.f32 %v508_v39, %v531_v40 }
 0x4ce   :  { %v535_v19 = vsub.f32 %v508_v39, %v533_v41  ;;  %v541_v44 = vsub.f32 %v531_v40, %v533_v41 }
 0x4d0   :  { %v537_v45 = vmul.f32 1.442695, %v535_v19  ;;  %v543_v46 = vmul.f32 1.442695, %v541_v44 }
 0x4d1   :  { %v674_v47 = vpop.eup %673 }
 0x4d2   :  { %v676_v49 = vpop.eup %675  ;;  %677 = vpow2.f32 %v537_v45 }
 0x4d3   :  { %679 = vpow2.f32 %v543_v46  ;;  %v548_v51 = vadd.f32 %v676_v49, %v674_v47 }
 0x4d5   :  { %681 = vlog2.f32 %v548_v51 }
 0x4d8   :  { %v678_v53 = vpop.eup %677 }
 0x4d9   :  { %v680_v54 = vpop.eup %679 }
 0x4da   :  { %v547_v24 = vadd.f32 %v680_v54, %v678_v53 }
 0x4db   :  { %v682_v55 = vpop.eup %681 }
 0x4dc   :  { %v552_v43 = vmul.f32 0.6931472, %v682_v55  ;;  %683 = vlog2.f32 %v547_v24 }
 0x4de   :  { %v554_v50 = vadd.f32 %v552_v43, %v534_v30 }
 0x4e0   :  { %v564_v57 = vsub.f32 %v532_v28, %v554_v50  ;;  %v560_v58 = vsub.f32 %v509_v27, %v554_v50 }
 0x4e2   :  { %v684_v59 = vpop.eup %683  ;;  %v566_v60 = vadd.f32 %v564_v57, %v558_v56  ;;  %v562_v62 = vadd.f32 %v560_v58, %v558_v56 }
 0x4e3   :  { %v550_v63 = vmul.f32 0.6931472, %v684_v59 }
 0x4e4   :  { %571 = vrot.lane.b32.xlu1 %v566_v60, %s742_s26 }
 0x4e5   :  { %v553_v0 = vadd.f32 %v550_v63, %v533_v41 }
 0x4e7   :  { %v563_v1 = vsub.f32 %v531_v40, %v553_v0  ;;  %v559_v2 = vsub.f32 %v508_v39, %v553_v0 }
 0x4e9   :  { %v565_v4 = vadd.f32 %v563_v1, %v557_v3  ;;  %v561_v5 = vadd.f32 %v559_v2, %v557_v3 }
 0x4eb   :  { %569 = vrot.lane.b32.xlu0 %v565_v4, %s742_s26 }
 0x556   :  { %v572_v6 = vpop.permute.xlu1 %571 }
 0x557   :  { %v577_v7 = vsel %vm575_vm0, %v562_v62, %v572_v6 }
 0x558   :  { %580 = vst.msk [vmem:[%s1054_s10 + $0x8] sm:$0xff] %vm578_vm2, %v577_v7 }
 0x55d   :  { %v570_v8 = vpop.permute.xlu0 %569 }
 0x55e   :  { %v576_v10 = vsel %vm575_vm0, %v561_v5, %v570_v8 }
 0x55f   :  { %579 = vst.msk [vmem:[%s1054_s10] sm:$0xff] %vm578_vm2, %v576_v10 }
 0x560   :  { %733 = dma.done.wait [#allocation3], 256  }
 0x561   :  { %734 = vsyncadd [#allocation3], 4294967040 }
 0x562   :  { %735 = dma.done.wait [#allocation5], 256  }
 0x563   :  { %736 = vsyncadd [#allocation5], 4294967040 }
 0x564   :  { %619 = vsyncpa [#allocation3], 1 }
 0x565   :  { %620 = vsyncpa [#allocation5], 1 }

</bundles_post_ra>
